<compile_context>
chip_gen: v5e
topology: v5e:2x2
jax: 0.10.0
libtpu: 0.0.40
codegen_flags: <defaults>
</compile_context>

<pallas_src>
import functools

import jax
import jax.numpy as jnp
from jax.experimental import pallas as pl
from jax.experimental.pallas import tpu as pltpu


def _edge_softmax(e, mask):
    """LeakyReLU(0.2) + masked softmax over incoming edges (last axis)."""
    e = jnp.where(e > 0, e, 0.2 * e)
    e = jnp.where(mask, e, jnp.float32(-1e30))
    e = e - jnp.max(e, axis=-1, keepdims=True)
    p = jnp.where(mask, jnp.exp(e), 0.0)
    denom = jnp.sum(p, axis=-1, keepdims=True)   # self loops guarantee >= 1 unmasked entry
    return p * pl.reciprocal(denom, approx=True)


def gat_fused_kernel(x_ref, adj_ref, w1_ref, wa1s_ref, b1_ref,
                     w2_ref, wa2s_ref, b2_ref, out_ref, z_ref,
                     *, heads, hid, num_classes):
    """Whole 2-layer GAT forward on the (small) graph.

    x_ref:    (N, F_in)           node features
    adj_ref:  (N, N)              adj[i, j] = 1 iff edge j -> i (incl. self loop)
    w1_ref:   (F_in, H*hid + H)   [proj columns (head-major) | per-head (W1_h @ att_dst_h)]
    wa1s_ref: (H, F_in)           row h = W1_h @ att_src_h
    b1_ref:   (1, H*hid)          conv1 bias
    w2_ref:   (H*hid, C + 1)      [proj columns | W2 @ att_dst2]
    wa2s_ref: (1, H*hid)          W2 @ att_src2
    b2_ref:   (1, C)              conv2 bias
    out_ref:  (N, C)              output
    z_ref:    (N, H*hid)          VMEM scratch: lane-dense concatenated conv1 output
    """
    x = x_ref[...]                                   # (N, F_in)
    mask = adj_ref[...] > 0                          # (N, N)
    hw = heads * hid

    # ---- conv1: all heads in a single MXU pass --------------------------------
    proj1 = jnp.dot(x, w1_ref[...], preferred_element_type=jnp.float32)   # (N, hw+H)
    h_all = proj1[:, :hw]                            # (N, H*hid) lane-dense projections
    a_dst = proj1[:, hw:hw + heads]                  # (N, H)   per-head  h_i . att_dst
    # per-head h_j . att_src with node index j on the LANE axis (trans-B matmul)
    a_src_t = jnp.einsum('hf,nf->hn', wa1s_ref[...], x,
                         preferred_element_type=jnp.float32)              # (H, N)

    # tiny (N, N) = (8, 8) per-head softmaxes on views of the fused projection
    for h in range(heads):
        e = a_dst[:, h:h + 1] + a_src_t[h:h + 1, :]  # e[i, j] = dst_i + src_j
        attn = _edge_softmax(e, mask)                # (N, N)
        z_ref[:, pl.ds(h * hid, hid)] = jnp.dot(
            attn, h_all[:, h * hid:(h + 1) * hid],
            preferred_element_type=jnp.float32)

    # conv1 bias + ELU (dropout is identity in eval mode)
    z = z_ref[...] + b1_ref[...]                     # (N, H*hid) = (8, 128)
    z = jnp.where(z > 0, z, jnp.exp(jnp.minimum(z, 0.0)) - 1.0)

    # ---- conv2: single head, concat=False --------------------------------------
    proj2 = jnp.dot(z, w2_ref[...], preferred_element_type=jnp.float32)   # (N, C+1)
    h2 = proj2[:, :num_classes]                      # (N, C)
    a2_dst = proj2[:, num_classes:num_classes + 1]   # (N, 1)
    a2_src_t = jnp.einsum('of,nf->on', wa2s_ref[...], z,
                          preferred_element_type=jnp.float32)             # (1, N)
    attn2 = _edge_softmax(a2_dst + a2_src_t, mask)   # (N, N)
    out_ref[...] = (jnp.dot(attn2, h2, preferred_element_type=jnp.float32)
                    + b2_ref[...])


@jax.jit
def gat_forward(x, adj, params):
    W1, a_src1, a_dst1, b1 = params["W1"], params["a_src1"], params["a_dst1"], params["b1"]
    W2, a_src2, a_dst2, b2 = params["W2"], params["a_src2"], params["a_dst2"], params["b2"]
    H, F_in, hid = W1.shape
    C = W2.shape[-1]
    N = x.shape[0]

    # Fold per-head parameters into lane-dense fused operands (tiny, done once by XLA).
    w1_flat = jnp.transpose(W1, (1, 0, 2)).reshape(F_in, H * hid)       # (F_in, H*hid), head-major cols
    wa1_dst = jnp.einsum('hfd,hd->fh', W1, a_dst1)                      # (F_in, H)
    w1_aug = jnp.concatenate([w1_flat, wa1_dst], axis=1)                # (F_in, H*hid + H)
    wa1_src = jnp.einsum('hfd,hd->hf', W1, a_src1)                      # (H, F_in)

    w2 = W2[0]                                                          # (H*hid, C)
    w2_aug = jnp.concatenate([w2, (w2 @ a_dst2[0])[:, None]], axis=1)   # (H*hid, C+1)
    wa2_src = (w2 @ a_src2[0])[None, :]                                 # (1, H*hid)

    kernel = functools.partial(gat_fused_kernel, heads=H, hid=hid, num_classes=C)
    return pl.pallas_call(
        kernel,
        out_shape=jax.ShapeDtypeStruct((N, C), jnp.float32),
        scratch_shapes=[pltpu.VMEM((N, H * hid), jnp.float32)],         # conv1 activations, lane-dense
    )(x, adj, w1_aug, wa1_src, b1[None, :], w2_aug, wa2_src, b2[None, :])


def gat_reference(x, adj, params):
    """Pure-JAX reference with PyG GATConv (eval-mode) semantics."""
    def conv(h_in, W, a_s, a_d):
        h = jnp.einsum('nf,hfd->hnd', h_in, W)                # (H, N, d)
        als = jnp.einsum('hnd,hd->hn', h, a_s)                # source scores
        ald = jnp.einsum('hnd,hd->hn', h, a_d)                # target scores
        e = ald[:, :, None] + als[:, None, :]                 # (H, N, N)
        e = jnp.where(e > 0, e, 0.2 * e)
        mask = (adj > 0)[None]
        e = jnp.where(mask, e, -1e30)
        e = e - jnp.max(e, axis=-1, keepdims=True)
        p = jnp.where(mask, jnp.exp(e), 0.0)
        attn = p / jnp.sum(p, axis=-1, keepdims=True)
        return jnp.einsum('hij,hjd->hid', attn, h)            # (H, N, d)

    h1 = conv(x, params["W1"], params["a_src1"], params["a_dst1"])
    H, N, hid = h1.shape
    z = jnp.transpose(h1, (1, 0, 2)).reshape(N, H * hid) + params["b1"]
    z = jnp.where(z > 0, z, jnp.exp(jnp.minimum(z, 0.0)) - 1.0)
    h2 = conv(z, params["W2"], params["a_src2"], params["a_dst2"])
    return h2[0] + params["b2"]


def _glorot(key, shape):
    fan_in, fan_out = shape[-2], shape[-1]
    lim = (6.0 / (fan_in + fan_out)) ** 0.5
    return jax.random.uniform(key, shape, jnp.float32, -lim, lim)


if __name__ == "__main__":
    N, dim_in, dim_hidden, heads, num_classes = 8, 32, 16, 8, 4

    key = jax.random.PRNGKey(0)
    kx, k1, k2, k3, k4, k5, k6 = jax.random.split(key, 7)

    # Node features.
    x = jax.random.normal(kx, (N, dim_in), jnp.float32)

    # Deterministic ring graph as edge_index [2, E] (src row 0, dst row 1).
    src = jnp.arange(N)
    dst = (src + 1) % N
    edge_index = jnp.stack(
        [jnp.concatenate([src, dst]), jnp.concatenate([dst, src])]
    )
    # Dense adjacency adj[target, source]; add self loops (PyG add_self_loops=True).
    adj = jnp.zeros((N, N), jnp.float32).at[edge_index[1], edge_index[0]].set(1.0)
    adj = jnp.maximum(adj, jnp.eye(N, dtype=jnp.float32))

    params = dict(
        # conv1: GATConv(dim_in, dim_hidden, heads=8, concat=True)
        W1=_glorot(k1, (heads, dim_in, dim_hidden)),
        a_src1=0.1 * jax.random.normal(k2, (heads, dim_hidden), jnp.float32),
        a_dst1=0.1 * jax.random.normal(k3, (heads, dim_hidden), jnp.float32),
        b1=jnp.zeros((heads * dim_hidden,), jnp.float32),
        # conv2: GATConv(dim_hidden*heads, num_classes, heads=1, concat=False)
        W2=_glorot(k4, (1, heads * dim_hidden, num_classes)),
        a_src2=0.1 * jax.random.normal(k5, (1, num_classes), jnp.float32),
        a_dst2=0.1 * jax.random.normal(k6, (1, num_classes), jnp.float32),
        b2=jnp.zeros((num_classes,), jnp.float32),
    )

    out = gat_forward(x, adj, params)
    jax.block_until_ready(out)
    assert out.shape == (N, num_classes)

    ref = gat_reference(x, adj, params)
    assert jnp.allclose(out, ref, rtol=1e-2, atol=1e-2), (out, ref)

    print("KERNEL_OK")
</pallas_src>

<mosaic_0001>
module attributes {stable_mosaic.version = 11 : i64} {
  func.func @gat_fused_kernel(%arg0: memref<8x32xf32, #tpu.memory_space<vmem>>, %arg1: memref<8x8xf32, #tpu.memory_space<vmem>>, %arg2: memref<32x136xf32, #tpu.memory_space<vmem>>, %arg3: memref<8x32xf32, #tpu.memory_space<vmem>>, %arg4: memref<1x128xf32, #tpu.memory_space<vmem>>, %arg5: memref<128x5xf32, #tpu.memory_space<vmem>>, %arg6: memref<1x128xf32, #tpu.memory_space<vmem>>, %arg7: memref<1x4xf32, #tpu.memory_space<vmem>>, %arg8: memref<8x4xf32, #tpu.memory_space<vmem>>, %arg9: memref<8x128xf32, #tpu.memory_space<vmem>>) attributes {dimension_semantics = [], scalar_prefetch = 0 : i64, scratch_operands = 1 : i64, tpu.core_type = #tpu.core_type<tc>} {
    %c0 = arith.constant 0 : index
    %c0_0 = arith.constant 0 : index
    %0 = vector.load %arg0[%c0, %c0_0] : memref<8x32xf32, #tpu.memory_space<vmem>>, vector<8x32xf32>
    %c0_1 = arith.constant 0 : index
    %c0_2 = arith.constant 0 : index
    %1 = vector.load %arg1[%c0_1, %c0_2] : memref<8x8xf32, #tpu.memory_space<vmem>>, vector<8x8xf32>
    %cst = arith.constant 0.000000e+00 : f32
    %2 = vector.broadcast %cst : f32 to vector<8x8xf32>
    %3 = arith.cmpf ogt, %1, %2 : vector<8x8xf32>
    %c0_3 = arith.constant 0 : index
    %c0_4 = arith.constant 0 : index
    %4 = vector.load %arg2[%c0_3, %c0_4] : memref<32x136xf32, #tpu.memory_space<vmem>>, vector<32x136xf32>
    %cst_5 = arith.constant dense<0.000000e+00> : vector<8x136xf32>
    %5 = tpu.matmul %0, %4, %cst_5 {dimension_numbers = #tpu.dot_dimension_numbers<[1], [0], [0], [1], [0, 0, 1, 1], [], []>} : vector<8x32xf32>, vector<32x136xf32>, vector<8x136xf32> -> vector<8x136xf32>
    %6 = vector.extract_strided_slice %5 {offsets = [0, 0], sizes = [8, 128], strides = [1, 1]} : vector<8x136xf32> to vector<8x128xf32>
    %7 = vector.extract_strided_slice %5 {offsets = [0, 128], sizes = [8, 8], strides = [1, 1]} : vector<8x136xf32> to vector<8x8xf32>
    %c0_6 = arith.constant 0 : index
    %c0_7 = arith.constant 0 : index
    %8 = vector.load %arg3[%c0_6, %c0_7] : memref<8x32xf32, #tpu.memory_space<vmem>>, vector<8x32xf32>
    "tpu.trace_start"() <{level = 10 : i32, message = "hf,nf->hn"}> : () -> ()
    %cst_8 = arith.constant dense<0.000000e+00> : vector<8x8xf32>
    %9 = tpu.matmul %8, %0, %cst_8 {dimension_numbers = #tpu.dot_dimension_numbers<[1], [1], [0], [0], [0, 0, 1, 0], [], []>} : vector<8x32xf32>, vector<8x32xf32>, vector<8x8xf32> -> vector<8x8xf32>
    "tpu.trace_stop"() : () -> ()
    %10 = vector.extract_strided_slice %7 {offsets = [0, 0], sizes = [8, 1], strides = [1, 1]} : vector<8x8xf32> to vector<8x1xf32>
    %11 = vector.extract_strided_slice %9 {offsets = [0, 0], sizes = [1, 8], strides = [1, 1]} : vector<8x8xf32> to vector<1x8xf32>
    %12 = vector.broadcast %10 : vector<8x1xf32> to vector<8x8xf32>
    %13 = vector.broadcast %11 : vector<1x8xf32> to vector<8x8xf32>
    %14 = arith.addf %12, %13 : vector<8x8xf32>
    %cst_9 = arith.constant 0.000000e+00 : f32
    %15 = vector.broadcast %cst_9 : f32 to vector<8x8xf32>
    %16 = arith.cmpf ogt, %14, %15 : vector<8x8xf32>
    %cst_10 = arith.constant 2.000000e-01 : f32
    %17 = vector.broadcast %cst_10 : f32 to vector<8x8xf32>
    %18 = arith.mulf %17, %14 : vector<8x8xf32>
    %19 = arith.select %16, %14, %18 : vector<8x8xi1>, vector<8x8xf32>
    %cst_11 = arith.constant -1.000000e+30 : f32
    %20 = vector.broadcast %cst_11 : f32 to vector<8x8xf32>
    %21 = arith.select %3, %19, %20 : vector<8x8xi1>, vector<8x8xf32>
    %cst_12 = arith.constant dense<0xFF800000> : vector<8xf32>
    %22 = vector.multi_reduction <maximumf>, %21, %cst_12 [1] : vector<8x8xf32> to vector<8xf32>
    %23 = vector.shape_cast %22 : vector<8xf32> to vector<8x1xf32>
    %24 = vector.broadcast %23 : vector<8x1xf32> to vector<8x8xf32>
    %25 = arith.subf %21, %24 : vector<8x8xf32>
    %26 = math.exp %25 : vector<8x8xf32>
    %cst_13 = arith.constant 0.000000e+00 : f32
    %27 = vector.broadcast %cst_13 : f32 to vector<8x8xf32>
    %28 = arith.select %3, %26, %27 : vector<8x8xi1>, vector<8x8xf32>
    %cst_14 = arith.constant dense<0.000000e+00> : vector<8xf32>
    %29 = vector.multi_reduction <add>, %28, %cst_14 [1] : vector<8x8xf32> to vector<8xf32>
    %30 = vector.shape_cast %29 : vector<8xf32> to vector<8x1xf32>
    %31 = tpu.reciprocal %30 {approx = true} : vector<8x1xf32> -> vector<8x1xf32>
    %32 = vector.broadcast %31 : vector<8x1xf32> to vector<8x8xf32>
    %33 = arith.mulf %28, %32 : vector<8x8xf32>
    %34 = vector.extract_strided_slice %6 {offsets = [0, 0], sizes = [8, 16], strides = [1, 1]} : vector<8x128xf32> to vector<8x16xf32>
    %cst_15 = arith.constant dense<0.000000e+00> : vector<8x16xf32>
    %35 = tpu.matmul %33, %34, %cst_15 {dimension_numbers = #tpu.dot_dimension_numbers<[1], [0], [0], [1], [0, 0, 1, 1], [], []>} : vector<8x8xf32>, vector<8x16xf32>, vector<8x16xf32> -> vector<8x16xf32>
    %c0_16 = arith.constant 0 : index
    %c0_17 = arith.constant 0 : index
    %36 = vector.load %arg9[%c0_16, %c0_17] : memref<8x128xf32, #tpu.memory_space<vmem>>, vector<8x16xf32>
    tpu.vector_store %arg9[%c0_16, %c0_17], %35 {strides = array<i32>} : memref<8x128xf32, #tpu.memory_space<vmem>>, vector<8x16xf32>,
    %37 = vector.extract_strided_slice %7 {offsets = [0, 1], sizes = [8, 1], strides = [1, 1]} : vector<8x8xf32> to vector<8x1xf32>
    %38 = vector.extract_strided_slice %9 {offsets = [1, 0], sizes = [1, 8], strides = [1, 1]} : vector<8x8xf32> to vector<1x8xf32>
    %39 = vector.broadcast %37 : vector<8x1xf32> to vector<8x8xf32>
    %40 = vector.broadcast %38 : vector<1x8xf32> to vector<8x8xf32>
    %41 = arith.addf %39, %40 : vector<8x8xf32>
    %cst_18 = arith.constant 0.000000e+00 : f32
    %42 = vector.broadcast %cst_18 : f32 to vector<8x8xf32>
    %43 = arith.cmpf ogt, %41, %42 : vector<8x8xf32>
    %cst_19 = arith.constant 2.000000e-01 : f32
    %44 = vector.broadcast %cst_19 : f32 to vector<8x8xf32>
    %45 = arith.mulf %44, %41 : vector<8x8xf32>
    %46 = arith.select %43, %41, %45 : vector<8x8xi1>, vector<8x8xf32>
    %cst_20 = arith.constant -1.000000e+30 : f32
    %47 = vector.broadcast %cst_20 : f32 to vector<8x8xf32>
    %48 = arith.select %3, %46, %47 : vector<8x8xi1>, vector<8x8xf32>
    %cst_21 = arith.constant dense<0xFF800000> : vector<8xf32>
    %49 = vector.multi_reduction <maximumf>, %48, %cst_21 [1] : vector<8x8xf32> to vector<8xf32>
    %50 = vector.shape_cast %49 : vector<8xf32> to vector<8x1xf32>
    %51 = vector.broadcast %50 : vector<8x1xf32> to vector<8x8xf32>
    %52 = arith.subf %48, %51 : vector<8x8xf32>
    %53 = math.exp %52 : vector<8x8xf32>
    %cst_22 = arith.constant 0.000000e+00 : f32
    %54 = vector.broadcast %cst_22 : f32 to vector<8x8xf32>
    %55 = arith.select %3, %53, %54 : vector<8x8xi1>, vector<8x8xf32>
    %cst_23 = arith.constant dense<0.000000e+00> : vector<8xf32>
    %56 = vector.multi_reduction <add>, %55, %cst_23 [1] : vector<8x8xf32> to vector<8xf32>
    %57 = vector.shape_cast %56 : vector<8xf32> to vector<8x1xf32>
    %58 = tpu.reciprocal %57 {approx = true} : vector<8x1xf32> -> vector<8x1xf32>
    %59 = vector.broadcast %58 : vector<8x1xf32> to vector<8x8xf32>
    %60 = arith.mulf %55, %59 : vector<8x8xf32>
    %61 = vector.extract_strided_slice %6 {offsets = [0, 16], sizes = [8, 16], strides = [1, 1]} : vector<8x128xf32> to vector<8x16xf32>
    %cst_24 = arith.constant dense<0.000000e+00> : vector<8x16xf32>
    %62 = tpu.matmul %60, %61, %cst_24 {dimension_numbers = #tpu.dot_dimension_numbers<[1], [0], [0], [1], [0, 0, 1, 1], [], []>} : vector<8x8xf32>, vector<8x16xf32>, vector<8x16xf32> -> vector<8x16xf32>
    %c0_25 = arith.constant 0 : index
    %c16 = arith.constant 16 : index
    %63 = vector.load %arg9[%c0_25, %c16] : memref<8x128xf32, #tpu.memory_space<vmem>>, vector<8x16xf32>
    tpu.vector_store %arg9[%c0_25, %c16], %62 {strides = array<i32>} : memref<8x128xf32, #tpu.memory_space<vmem>>, vector<8x16xf32>,
    %64 = vector.extract_strided_slice %7 {offsets = [0, 2], sizes = [8, 1], strides = [1, 1]} : vector<8x8xf32> to vector<8x1xf32>
    %65 = vector.extract_strided_slice %9 {offsets = [2, 0], sizes = [1, 8], strides = [1, 1]} : vector<8x8xf32> to vector<1x8xf32>
    %66 = vector.broadcast %64 : vector<8x1xf32> to vector<8x8xf32>
    %67 = vector.broadcast %65 : vector<1x8xf32> to vector<8x8xf32>
    %68 = arith.addf %66, %67 : vector<8x8xf32>
    %cst_26 = arith.constant 0.000000e+00 : f32
    %69 = vector.broadcast %cst_26 : f32 to vector<8x8xf32>
    %70 = arith.cmpf ogt, %68, %69 : vector<8x8xf32>
    %cst_27 = arith.constant 2.000000e-01 : f32
    %71 = vector.broadcast %cst_27 : f32 to vector<8x8xf32>
    %72 = arith.mulf %71, %68 : vector<8x8xf32>
    %73 = arith.select %70, %68, %72 : vector<8x8xi1>, vector<8x8xf32>
    %cst_28 = arith.constant -1.000000e+30 : f32
    %74 = vector.broadcast %cst_28 : f32 to vector<8x8xf32>
    %75 = arith.select %3, %73, %74 : vector<8x8xi1>, vector<8x8xf32>
    %cst_29 = arith.constant dense<0xFF800000> : vector<8xf32>
    %76 = vector.multi_reduction <maximumf>, %75, %cst_29 [1] : vector<8x8xf32> to vector<8xf32>
    %77 = vector.shape_cast %76 : vector<8xf32> to vector<8x1xf32>
    %78 = vector.broadcast %77 : vector<8x1xf32> to vector<8x8xf32>
    %79 = arith.subf %75, %78 : vector<8x8xf32>
    %80 = math.exp %79 : vector<8x8xf32>
    %cst_30 = arith.constant 0.000000e+00 : f32
    %81 = vector.broadcast %cst_30 : f32 to vector<8x8xf32>
    %82 = arith.select %3, %80, %81 : vector<8x8xi1>, vector<8x8xf32>
    %cst_31 = arith.constant dense<0.000000e+00> : vector<8xf32>
    %83 = vector.multi_reduction <add>, %82, %cst_31 [1] : vector<8x8xf32> to vector<8xf32>
    %84 = vector.shape_cast %83 : vector<8xf32> to vector<8x1xf32>
    %85 = tpu.reciprocal %84 {approx = true} : vector<8x1xf32> -> vector<8x1xf32>
    %86 = vector.broadcast %85 : vector<8x1xf32> to vector<8x8xf32>
    %87 = arith.mulf %82, %86 : vector<8x8xf32>
    %88 = vector.extract_strided_slice %6 {offsets = [0, 32], sizes = [8, 16], strides = [1, 1]} : vector<8x128xf32> to vector<8x16xf32>
    %cst_32 = arith.constant dense<0.000000e+00> : vector<8x16xf32>
    %89 = tpu.matmul %87, %88, %cst_32 {dimension_numbers = #tpu.dot_dimension_numbers<[1], [0], [0], [1], [0, 0, 1, 1], [], []>} : vector<8x8xf32>, vector<8x16xf32>, vector<8x16xf32> -> vector<8x16xf32>
    %c0_33 = arith.constant 0 : index
    %c32 = arith.constant 32 : index
    %90 = vector.load %arg9[%c0_33, %c32] : memref<8x128xf32, #tpu.memory_space<vmem>>, vector<8x16xf32>
    tpu.vector_store %arg9[%c0_33, %c32], %89 {strides = array<i32>} : memref<8x128xf32, #tpu.memory_space<vmem>>, vector<8x16xf32>,
    %91 = vector.extract_strided_slice %7 {offsets = [0, 3], sizes = [8, 1], strides = [1, 1]} : vector<8x8xf32> to vector<8x1xf32>
    %92 = vector.extract_strided_slice %9 {offsets = [3, 0], sizes = [1, 8], strides = [1, 1]} : vector<8x8xf32> to vector<1x8xf32>
    %93 = vector.broadcast %91 : vector<8x1xf32> to vector<8x8xf32>
    %94 = vector.broadcast %92 : vector<1x8xf32> to vector<8x8xf32>
    %95 = arith.addf %93, %94 : vector<8x8xf32>
    %cst_34 = arith.constant 0.000000e+00 : f32
    %96 = vector.broadcast %cst_34 : f32 to vector<8x8xf32>
    %97 = arith.cmpf ogt, %95, %96 : vector<8x8xf32>
    %cst_35 = arith.constant 2.000000e-01 : f32
    %98 = vector.broadcast %cst_35 : f32 to vector<8x8xf32>
    %99 = arith.mulf %98, %95 : vector<8x8xf32>
    %100 = arith.select %97, %95, %99 : vector<8x8xi1>, vector<8x8xf32>
    %cst_36 = arith.constant -1.000000e+30 : f32
    %101 = vector.broadcast %cst_36 : f32 to vector<8x8xf32>
    %102 = arith.select %3, %100, %101 : vector<8x8xi1>, vector<8x8xf32>
    %cst_37 = arith.constant dense<0xFF800000> : vector<8xf32>
    %103 = vector.multi_reduction <maximumf>, %102, %cst_37 [1] : vector<8x8xf32> to vector<8xf32>
    %104 = vector.shape_cast %103 : vector<8xf32> to vector<8x1xf32>
    %105 = vector.broadcast %104 : vector<8x1xf32> to vector<8x8xf32>
    %106 = arith.subf %102, %105 : vector<8x8xf32>
    %107 = math.exp %106 : vector<8x8xf32>
    %cst_38 = arith.constant 0.000000e+00 : f32
    %108 = vector.broadcast %cst_38 : f32 to vector<8x8xf32>
    %109 = arith.select %3, %107, %108 : vector<8x8xi1>, vector<8x8xf32>
    %cst_39 = arith.constant dense<0.000000e+00> : vector<8xf32>
    %110 = vector.multi_reduction <add>, %109, %cst_39 [1] : vector<8x8xf32> to vector<8xf32>
    %111 = vector.shape_cast %110 : vector<8xf32> to vector<8x1xf32>
    %112 = tpu.reciprocal %111 {approx = true} : vector<8x1xf32> -> vector<8x1xf32>
    %113 = vector.broadcast %112 : vector<8x1xf32> to vector<8x8xf32>
    %114 = arith.mulf %109, %113 : vector<8x8xf32>
    %115 = vector.extract_strided_slice %6 {offsets = [0, 48], sizes = [8, 16], strides = [1, 1]} : vector<8x128xf32> to vector<8x16xf32>
    %cst_40 = arith.constant dense<0.000000e+00> : vector<8x16xf32>
    %116 = tpu.matmul %114, %115, %cst_40 {dimension_numbers = #tpu.dot_dimension_numbers<[1], [0], [0], [1], [0, 0, 1, 1], [], []>} : vector<8x8xf32>, vector<8x16xf32>, vector<8x16xf32> -> vector<8x16xf32>
    %c0_41 = arith.constant 0 : index
    %c48 = arith.constant 48 : index
    %117 = vector.load %arg9[%c0_41, %c48] : memref<8x128xf32, #tpu.memory_space<vmem>>, vector<8x16xf32>
    tpu.vector_store %arg9[%c0_41, %c48], %116 {strides = array<i32>} : memref<8x128xf32, #tpu.memory_space<vmem>>, vector<8x16xf32>,
    %118 = vector.extract_strided_slice %7 {offsets = [0, 4], sizes = [8, 1], strides = [1, 1]} : vector<8x8xf32> to vector<8x1xf32>
    %119 = vector.extract_strided_slice %9 {offsets = [4, 0], sizes = [1, 8], strides = [1, 1]} : vector<8x8xf32> to vector<1x8xf32>
    %120 = vector.broadcast %118 : vector<8x1xf32> to vector<8x8xf32>
    %121 = vector.broadcast %119 : vector<1x8xf32> to vector<8x8xf32>
    %122 = arith.addf %120, %121 : vector<8x8xf32>
    %cst_42 = arith.constant 0.000000e+00 : f32
    %123 = vector.broadcast %cst_42 : f32 to vector<8x8xf32>
    %124 = arith.cmpf ogt, %122, %123 : vector<8x8xf32>
    %cst_43 = arith.constant 2.000000e-01 : f32
    %125 = vector.broadcast %cst_43 : f32 to vector<8x8xf32>
    %126 = arith.mulf %125, %122 : vector<8x8xf32>
    %127 = arith.select %124, %122, %126 : vector<8x8xi1>, vector<8x8xf32>
    %cst_44 = arith.constant -1.000000e+30 : f32
    %128 = vector.broadcast %cst_44 : f32 to vector<8x8xf32>
    %129 = arith.select %3, %127, %128 : vector<8x8xi1>, vector<8x8xf32>
    %cst_45 = arith.constant dense<0xFF800000> : vector<8xf32>
    %130 = vector.multi_reduction <maximumf>, %129, %cst_45 [1] : vector<8x8xf32> to vector<8xf32>
    %131 = vector.shape_cast %130 : vector<8xf32> to vector<8x1xf32>
    %132 = vector.broadcast %131 : vector<8x1xf32> to vector<8x8xf32>
    %133 = arith.subf %129, %132 : vector<8x8xf32>
    %134 = math.exp %133 : vector<8x8xf32>
    %cst_46 = arith.constant 0.000000e+00 : f32
    %135 = vector.broadcast %cst_46 : f32 to vector<8x8xf32>
    %136 = arith.select %3, %134, %135 : vector<8x8xi1>, vector<8x8xf32>
    %cst_47 = arith.constant dense<0.000000e+00> : vector<8xf32>
    %137 = vector.multi_reduction <add>, %136, %cst_47 [1] : vector<8x8xf32> to vector<8xf32>
    %138 = vector.shape_cast %137 : vector<8xf32> to vector<8x1xf32>
    %139 = tpu.reciprocal %138 {approx = true} : vector<8x1xf32> -> vector<8x1xf32>
    %140 = vector.broadcast %139 : vector<8x1xf32> to vector<8x8xf32>
    %141 = arith.mulf %136, %140 : vector<8x8xf32>
    %142 = vector.extract_strided_slice %6 {offsets = [0, 64], sizes = [8, 16], strides = [1, 1]} : vector<8x128xf32> to vector<8x16xf32>
    %cst_48 = arith.constant dense<0.000000e+00> : vector<8x16xf32>
    %143 = tpu.matmul %141, %142, %cst_48 {dimension_numbers = #tpu.dot_dimension_numbers<[1], [0], [0], [1], [0, 0, 1, 1], [], []>} : vector<8x8xf32>, vector<8x16xf32>, vector<8x16xf32> -> vector<8x16xf32>
    %c0_49 = arith.constant 0 : index
    %c64 = arith.constant 64 : index
    %144 = vector.load %arg9[%c0_49, %c64] : memref<8x128xf32, #tpu.memory_space<vmem>>, vector<8x16xf32>
    tpu.vector_store %arg9[%c0_49, %c64], %143 {strides = array<i32>} : memref<8x128xf32, #tpu.memory_space<vmem>>, vector<8x16xf32>,
    %145 = vector.extract_strided_slice %7 {offsets = [0, 5], sizes = [8, 1], strides = [1, 1]} : vector<8x8xf32> to vector<8x1xf32>
    %146 = vector.extract_strided_slice %9 {offsets = [5, 0], sizes = [1, 8], strides = [1, 1]} : vector<8x8xf32> to vector<1x8xf32>
    %147 = vector.broadcast %145 : vector<8x1xf32> to vector<8x8xf32>
    %148 = vector.broadcast %146 : vector<1x8xf32> to vector<8x8xf32>
    %149 = arith.addf %147, %148 : vector<8x8xf32>
    %cst_50 = arith.constant 0.000000e+00 : f32
    %150 = vector.broadcast %cst_50 : f32 to vector<8x8xf32>
    %151 = arith.cmpf ogt, %149, %150 : vector<8x8xf32>
    %cst_51 = arith.constant 2.000000e-01 : f32
    %152 = vector.broadcast %cst_51 : f32 to vector<8x8xf32>
    %153 = arith.mulf %152, %149 : vector<8x8xf32>
    %154 = arith.select %151, %149, %153 : vector<8x8xi1>, vector<8x8xf32>
    %cst_52 = arith.constant -1.000000e+30 : f32
    %155 = vector.broadcast %cst_52 : f32 to vector<8x8xf32>
    %156 = arith.select %3, %154, %155 : vector<8x8xi1>, vector<8x8xf32>
    %cst_53 = arith.constant dense<0xFF800000> : vector<8xf32>
    %157 = vector.multi_reduction <maximumf>, %156, %cst_53 [1] : vector<8x8xf32> to vector<8xf32>
    %158 = vector.shape_cast %157 : vector<8xf32> to vector<8x1xf32>
    %159 = vector.broadcast %158 : vector<8x1xf32> to vector<8x8xf32>
    %160 = arith.subf %156, %159 : vector<8x8xf32>
    %161 = math.exp %160 : vector<8x8xf32>
    %cst_54 = arith.constant 0.000000e+00 : f32
    %162 = vector.broadcast %cst_54 : f32 to vector<8x8xf32>
    %163 = arith.select %3, %161, %162 : vector<8x8xi1>, vector<8x8xf32>
    %cst_55 = arith.constant dense<0.000000e+00> : vector<8xf32>
    %164 = vector.multi_reduction <add>, %163, %cst_55 [1] : vector<8x8xf32> to vector<8xf32>
    %165 = vector.shape_cast %164 : vector<8xf32> to vector<8x1xf32>
    %166 = tpu.reciprocal %165 {approx = true} : vector<8x1xf32> -> vector<8x1xf32>
    %167 = vector.broadcast %166 : vector<8x1xf32> to vector<8x8xf32>
    %168 = arith.mulf %163, %167 : vector<8x8xf32>
    %169 = vector.extract_strided_slice %6 {offsets = [0, 80], sizes = [8, 16], strides = [1, 1]} : vector<8x128xf32> to vector<8x16xf32>
    %cst_56 = arith.constant dense<0.000000e+00> : vector<8x16xf32>
    %170 = tpu.matmul %168, %169, %cst_56 {dimension_numbers = #tpu.dot_dimension_numbers<[1], [0], [0], [1], [0, 0, 1, 1], [], []>} : vector<8x8xf32>, vector<8x16xf32>, vector<8x16xf32> -> vector<8x16xf32>
    %c0_57 = arith.constant 0 : index
    %c80 = arith.constant 80 : index
    %171 = vector.load %arg9[%c0_57, %c80] : memref<8x128xf32, #tpu.memory_space<vmem>>, vector<8x16xf32>
    tpu.vector_store %arg9[%c0_57, %c80], %170 {strides = array<i32>} : memref<8x128xf32, #tpu.memory_space<vmem>>, vector<8x16xf32>,
    %172 = vector.extract_strided_slice %7 {offsets = [0, 6], sizes = [8, 1], strides = [1, 1]} : vector<8x8xf32> to vector<8x1xf32>
    %173 = vector.extract_strided_slice %9 {offsets = [6, 0], sizes = [1, 8], strides = [1, 1]} : vector<8x8xf32> to vector<1x8xf32>
    %174 = vector.broadcast %172 : vector<8x1xf32> to vector<8x8xf32>
    %175 = vector.broadcast %173 : vector<1x8xf32> to vector<8x8xf32>
    %176 = arith.addf %174, %175 : vector<8x8xf32>
    %cst_58 = arith.constant 0.000000e+00 : f32
    %177 = vector.broadcast %cst_58 : f32 to vector<8x8xf32>
    %178 = arith.cmpf ogt, %176, %177 : vector<8x8xf32>
    %cst_59 = arith.constant 2.000000e-01 : f32
    %179 = vector.broadcast %cst_59 : f32 to vector<8x8xf32>
    %180 = arith.mulf %179, %176 : vector<8x8xf32>
    %181 = arith.select %178, %176, %180 : vector<8x8xi1>, vector<8x8xf32>
    %cst_60 = arith.constant -1.000000e+30 : f32
    %182 = vector.broadcast %cst_60 : f32 to vector<8x8xf32>
    %183 = arith.select %3, %181, %182 : vector<8x8xi1>, vector<8x8xf32>
    %cst_61 = arith.constant dense<0xFF800000> : vector<8xf32>
    %184 = vector.multi_reduction <maximumf>, %183, %cst_61 [1] : vector<8x8xf32> to vector<8xf32>
    %185 = vector.shape_cast %184 : vector<8xf32> to vector<8x1xf32>
    %186 = vector.broadcast %185 : vector<8x1xf32> to vector<8x8xf32>
    %187 = arith.subf %183, %186 : vector<8x8xf32>
    %188 = math.exp %187 : vector<8x8xf32>
    %cst_62 = arith.constant 0.000000e+00 : f32
    %189 = vector.broadcast %cst_62 : f32 to vector<8x8xf32>
    %190 = arith.select %3, %188, %189 : vector<8x8xi1>, vector<8x8xf32>
    %cst_63 = arith.constant dense<0.000000e+00> : vector<8xf32>
    %191 = vector.multi_reduction <add>, %190, %cst_63 [1] : vector<8x8xf32> to vector<8xf32>
    %192 = vector.shape_cast %191 : vector<8xf32> to vector<8x1xf32>
    %193 = tpu.reciprocal %192 {approx = true} : vector<8x1xf32> -> vector<8x1xf32>
    %194 = vector.broadcast %193 : vector<8x1xf32> to vector<8x8xf32>
    %195 = arith.mulf %190, %194 : vector<8x8xf32>
    %196 = vector.extract_strided_slice %6 {offsets = [0, 96], sizes = [8, 16], strides = [1, 1]} : vector<8x128xf32> to vector<8x16xf32>
    %cst_64 = arith.constant dense<0.000000e+00> : vector<8x16xf32>
    %197 = tpu.matmul %195, %196, %cst_64 {dimension_numbers = #tpu.dot_dimension_numbers<[1], [0], [0], [1], [0, 0, 1, 1], [], []>} : vector<8x8xf32>, vector<8x16xf32>, vector<8x16xf32> -> vector<8x16xf32>
    %c0_65 = arith.constant 0 : index
    %c96 = arith.constant 96 : index
    %198 = vector.load %arg9[%c0_65, %c96] : memref<8x128xf32, #tpu.memory_space<vmem>>, vector<8x16xf32>
    tpu.vector_store %arg9[%c0_65, %c96], %197 {strides = array<i32>} : memref<8x128xf32, #tpu.memory_space<vmem>>, vector<8x16xf32>,
    %199 = vector.extract_strided_slice %7 {offsets = [0, 7], sizes = [8, 1], strides = [1, 1]} : vector<8x8xf32> to vector<8x1xf32>
    %200 = vector.extract_strided_slice %9 {offsets = [7, 0], sizes = [1, 8], strides = [1, 1]} : vector<8x8xf32> to vector<1x8xf32>
    %201 = vector.broadcast %199 : vector<8x1xf32> to vector<8x8xf32>
    %202 = vector.broadcast %200 : vector<1x8xf32> to vector<8x8xf32>
    %203 = arith.addf %201, %202 : vector<8x8xf32>
    %cst_66 = arith.constant 0.000000e+00 : f32
    %204 = vector.broadcast %cst_66 : f32 to vector<8x8xf32>
    %205 = arith.cmpf ogt, %203, %204 : vector<8x8xf32>
    %cst_67 = arith.constant 2.000000e-01 : f32
    %206 = vector.broadcast %cst_67 : f32 to vector<8x8xf32>
    %207 = arith.mulf %206, %203 : vector<8x8xf32>
    %208 = arith.select %205, %203, %207 : vector<8x8xi1>, vector<8x8xf32>
    %cst_68 = arith.constant -1.000000e+30 : f32
    %209 = vector.broadcast %cst_68 : f32 to vector<8x8xf32>
    %210 = arith.select %3, %208, %209 : vector<8x8xi1>, vector<8x8xf32>
    %cst_69 = arith.constant dense<0xFF800000> : vector<8xf32>
    %211 = vector.multi_reduction <maximumf>, %210, %cst_69 [1] : vector<8x8xf32> to vector<8xf32>
    %212 = vector.shape_cast %211 : vector<8xf32> to vector<8x1xf32>
    %213 = vector.broadcast %212 : vector<8x1xf32> to vector<8x8xf32>
    %214 = arith.subf %210, %213 : vector<8x8xf32>
    %215 = math.exp %214 : vector<8x8xf32>
    %cst_70 = arith.constant 0.000000e+00 : f32
    %216 = vector.broadcast %cst_70 : f32 to vector<8x8xf32>
    %217 = arith.select %3, %215, %216 : vector<8x8xi1>, vector<8x8xf32>
    %cst_71 = arith.constant dense<0.000000e+00> : vector<8xf32>
    %218 = vector.multi_reduction <add>, %217, %cst_71 [1] : vector<8x8xf32> to vector<8xf32>
    %219 = vector.shape_cast %218 : vector<8xf32> to vector<8x1xf32>
    %220 = tpu.reciprocal %219 {approx = true} : vector<8x1xf32> -> vector<8x1xf32>
    %221 = vector.broadcast %220 : vector<8x1xf32> to vector<8x8xf32>
    %222 = arith.mulf %217, %221 : vector<8x8xf32>
    %223 = vector.extract_strided_slice %6 {offsets = [0, 112], sizes = [8, 16], strides = [1, 1]} : vector<8x128xf32> to vector<8x16xf32>
    %cst_72 = arith.constant dense<0.000000e+00> : vector<8x16xf32>
    %224 = tpu.matmul %222, %223, %cst_72 {dimension_numbers = #tpu.dot_dimension_numbers<[1], [0], [0], [1], [0, 0, 1, 1], [], []>} : vector<8x8xf32>, vector<8x16xf32>, vector<8x16xf32> -> vector<8x16xf32>
    %c0_73 = arith.constant 0 : index
    %c112 = arith.constant 112 : index
    %225 = vector.load %arg9[%c0_73, %c112] : memref<8x128xf32, #tpu.memory_space<vmem>>, vector<8x16xf32>
    tpu.vector_store %arg9[%c0_73, %c112], %224 {strides = array<i32>} : memref<8x128xf32, #tpu.memory_space<vmem>>, vector<8x16xf32>,
    %c0_74 = arith.constant 0 : index
    %c0_75 = arith.constant 0 : index
    %226 = vector.load %arg9[%c0_74, %c0_75] : memref<8x128xf32, #tpu.memory_space<vmem>>, vector<8x128xf32>
    %c0_76 = arith.constant 0 : index
    %c0_77 = arith.constant 0 : index
    %227 = vector.load %arg4[%c0_76, %c0_77] : memref<1x128xf32, #tpu.memory_space<vmem>>, vector<1x128xf32>
    %228 = vector.broadcast %227 : vector<1x128xf32> to vector<8x128xf32>
    %229 = arith.addf %226, %228 : vector<8x128xf32>
    %cst_78 = arith.constant 0.000000e+00 : f32
    %230 = vector.broadcast %cst_78 : f32 to vector<8x128xf32>
    %231 = arith.cmpf ogt, %229, %230 : vector<8x128xf32>
    %cst_79 = arith.constant 0.000000e+00 : f32
    %232 = vector.broadcast %cst_79 : f32 to vector<8x128xf32>
    %233 = arith.minimumf %229, %232 : vector<8x128xf32>
    %234 = math.exp %233 : vector<8x128xf32>
    %cst_80 = arith.constant 1.000000e+00 : f32
    %235 = vector.broadcast %cst_80 : f32 to vector<8x128xf32>
    %236 = arith.subf %234, %235 : vector<8x128xf32>
    %237 = arith.select %231, %229, %236 : vector<8x128xi1>, vector<8x128xf32>
    %c0_81 = arith.constant 0 : index
    %c0_82 = arith.constant 0 : index
    %238 = vector.load %arg5[%c0_81, %c0_82] : memref<128x5xf32, #tpu.memory_space<vmem>>, vector<128x5xf32>
    %cst_83 = arith.constant dense<0.000000e+00> : vector<8x5xf32>
    %239 = tpu.matmul %237, %238, %cst_83 {dimension_numbers = #tpu.dot_dimension_numbers<[1], [0], [0], [1], [0, 0, 1, 1], [], []>} : vector<8x128xf32>, vector<128x5xf32>, vector<8x5xf32> -> vector<8x5xf32>
    %240 = vector.extract_strided_slice %239 {offsets = [0, 0], sizes = [8, 4], strides = [1, 1]} : vector<8x5xf32> to vector<8x4xf32>
    %241 = vector.extract_strided_slice %239 {offsets = [0, 4], sizes = [8, 1], strides = [1, 1]} : vector<8x5xf32> to vector<8x1xf32>
    %c0_84 = arith.constant 0 : index
    %c0_85 = arith.constant 0 : index
    %242 = vector.load %arg6[%c0_84, %c0_85] : memref<1x128xf32, #tpu.memory_space<vmem>>, vector<1x128xf32>
    "tpu.trace_start"() <{level = 10 : i32, message = "of,nf->on"}> : () -> ()
    %cst_86 = arith.constant dense<0.000000e+00> : vector<1x8xf32>
    %243 = tpu.matmul %242, %237, %cst_86 {dimension_numbers = #tpu.dot_dimension_numbers<[1], [1], [0], [0], [0, 0, 1, 0], [], []>} : vector<1x128xf32>, vector<8x128xf32>, vector<1x8xf32> -> vector<1x8xf32>
    "tpu.trace_stop"() : () -> ()
    %244 = vector.broadcast %241 : vector<8x1xf32> to vector<8x8xf32>
    %245 = vector.broadcast %243 : vector<1x8xf32> to vector<8x8xf32>
    %246 = arith.addf %244, %245 : vector<8x8xf32>
    %cst_87 = arith.constant 0.000000e+00 : f32
    %247 = vector.broadcast %cst_87 : f32 to vector<8x8xf32>
    %248 = arith.cmpf ogt, %246, %247 : vector<8x8xf32>
    %cst_88 = arith.constant 2.000000e-01 : f32
    %249 = vector.broadcast %cst_88 : f32 to vector<8x8xf32>
    %250 = arith.mulf %249, %246 : vector<8x8xf32>
    %251 = arith.select %248, %246, %250 : vector<8x8xi1>, vector<8x8xf32>
    %cst_89 = arith.constant -1.000000e+30 : f32
    %252 = vector.broadcast %cst_89 : f32 to vector<8x8xf32>
    %253 = arith.select %3, %251, %252 : vector<8x8xi1>, vector<8x8xf32>
    %cst_90 = arith.constant dense<0xFF800000> : vector<8xf32>
    %254 = vector.multi_reduction <maximumf>, %253, %cst_90 [1] : vector<8x8xf32> to vector<8xf32>
    %255 = vector.shape_cast %254 : vector<8xf32> to vector<8x1xf32>
    %256 = vector.broadcast %255 : vector<8x1xf32> to vector<8x8xf32>
    %257 = arith.subf %253, %256 : vector<8x8xf32>
    %258 = math.exp %257 : vector<8x8xf32>
    %cst_91 = arith.constant 0.000000e+00 : f32
    %259 = vector.broadcast %cst_91 : f32 to vector<8x8xf32>
    %260 = arith.select %3, %258, %259 : vector<8x8xi1>, vector<8x8xf32>
    %cst_92 = arith.constant dense<0.000000e+00> : vector<8xf32>
    %261 = vector.multi_reduction <add>, %260, %cst_92 [1] : vector<8x8xf32> to vector<8xf32>
    %262 = vector.shape_cast %261 : vector<8xf32> to vector<8x1xf32>
    %263 = tpu.reciprocal %262 {approx = true} : vector<8x1xf32> -> vector<8x1xf32>
    %264 = vector.broadcast %263 : vector<8x1xf32> to vector<8x8xf32>
    %265 = arith.mulf %260, %264 : vector<8x8xf32>
    %cst_93 = arith.constant dense<0.000000e+00> : vector<8x4xf32>
    %266 = tpu.matmul %265, %240, %cst_93 {dimension_numbers = #tpu.dot_dimension_numbers<[1], [0], [0], [1], [0, 0, 1, 1], [], []>} : vector<8x8xf32>, vector<8x4xf32>, vector<8x4xf32> -> vector<8x4xf32>
    %c0_94 = arith.constant 0 : index
    %c0_95 = arith.constant 0 : index
    %267 = vector.load %arg7[%c0_94, %c0_95] : memref<1x4xf32, #tpu.memory_space<vmem>>, vector<1x4xf32>
    %268 = vector.broadcast %267 : vector<1x4xf32> to vector<8x4xf32>
    %269 = arith.addf %266, %268 : vector<8x4xf32>
    %c0_96 = arith.constant 0 : index
    %c0_97 = arith.constant 0 : index
    %270 = vector.load %arg8[%c0_96, %c0_97] : memref<8x4xf32, #tpu.memory_space<vmem>>, vector<8x4xf32>
    tpu.vector_store %arg8[%c0_96, %c0_97], %269 {strides = array<i32>} : memref<8x4xf32, #tpu.memory_space<vmem>>, vector<8x4xf32>,
    return
  }
}

</mosaic_0001>

<bundles_post_ra>
// kernel: gat_forward.1
= control target key start
LH: loop header
LB: loop body
LE: loop exit
PB: predicated region body
PF: predicated region fallthrough
CT: control target
= control target key end

     0   :  { %vm40_vm0 = vcmask 261120   ;;  %v739_v10 = vmov 5   ;;  %v740_v11 = vmov 2   ;;  %v741_v12 = vmov 0   ;;  %s742_s23 = smov 112   ;;  %s749_s25 = smov 96   ;;  %s1020_s2 = inlined_call_operand.vmem [shape: f32[32,136], index: 2, kind: input, shape index: {}]   ;;  %s1021_s0 = inlined_call_operand.vmem [shape: f32[8,32], index: 0, kind: input, shape index: {}]   ;;  %s1022_s3 = inlined_call_operand.vmem [shape: f32[8,32], index: 3, kind: input, shape index: {}]   ;;  %s1023_s1 = inlined_call_operand.vmem [shape: f32[8,8], index: 1, kind: input, shape index: {}]   ;;  %s1024_s4 = inlined_call_operand.vmem [shape: f32[1,128], index: 4, kind: input, shape index: {}]   ;;  %s1025_s5 = inlined_call_operand.vmem [shape: f32[128,5], index: 5, kind: input, shape index: {}]   ;;  %s1026_s6 = inlined_call_operand.vmem [shape: f32[1,128], index: 6, kind: input, shape index: {}]   ;;  %s1027_s7 = inlined_call_operand.vmem [shape: f32[1,4], index: 7, kind: input, shape index: {}]   ;;  %s1028_s8 = inlined_call_operand.vmem [shape: f32[8,4], index: 8, kind: output, shape index: {}]  }
   0x1   :  { %v38_v0 = vld [vmem:[%s1020_s2 + $0x30] sm:$0xff]  ;;  %v36_v1 = vld [vmem:[%s1020_s2 + $0x20] sm:$0xff]  ;;  %v39_v6 = vld [vmem:[%s1020_s2 + $0x38] sm:$0xff]  ;;  %694 = vset.pattern.permute.xlu2 %v739_v10  ;;  %692 = vset.pattern.permute.xlu1 %v740_v11  ;;  %v743_v15 = vmov 6   ;;  %v744_v16 = vmov 3   ;;  %v745_v17 = vmov 1  }
   0x2   :  { %56 = vmatpush.msra.mxu0 %v38_v0  ;;  %v29_v2 = vld [vmem:[%s1021_s0] sm:$0xff]  ;;  %v34_v3 = vld [vmem:[%s1020_s2 + $0x10] sm:$0xff]  ;;  %v37_v7 = vld [vmem:[%s1020_s2 + $0x28] sm:$0xff]  ;;  %690 = vset.pattern.permute.xlu0 %v741_v12  ;;  %v746_v18 = vmov 7   ;;  %v747_v19 = vmov 4   ;;  %vm119_vm4 = vcmask 64512  }
   0x3   :  { %663 = vmatpush.xpose.msk.msra.mxu2 %vm40_vm0, %v29_v2  ;;  %v84_v4 = vld [vmem:[%s1022_s3] sm:$0xff]  ;;  %v35_v8 = vld [vmem:[%s1020_s2 + $0x18] sm:$0xff]  ;;  %v33_v9 = vld [vmem:[%s1020_s2 + $0x8] sm:$0xff]  ;;  %s750_s26 = smov 32   ;;  %s751_s27 = smov 16   ;;  %vm155_vm11 = vcmask 130048  }
   0x4   :  { %57 = vmatpush.msra.mxu0 %v36_v1  ;;  %v32_v5 = vld [vmem:[%s1020_s2] sm:$0xff]  ;;  %s752_s28 = smov 64   ;;  %s753_s29 = smov 48   ;;  %vm210_vm12 = vcmask 261248   ;;  %vm264_vm13 = vcmask 392448   ;;  %vm318_vm14 = vcmask 523648  }
   0x5   :  { %v846_v32 = vld [vmem:[%s1023_s1] sm:$0xff]  ;;  %s748_s1 = smov 80   ;;  %vm372_vm15 = vcmask 654848  }
   0x6   :  { %58 = vmatpush.msra.mxu0 %v34_v3  ;;  %664 = vmatmul.msk.f32.vlgmr.msra.gmra.mxu2 %vm40_vm0, %v84_v4  ;;  %vm31_vm3 = vcmp.gt.f32.partialorder %v846_v32, 0.0 }
   0x8   :  { %59 = vmatpush.msra.mxu0 %v32_v5 }
   0x9   :  { %661 = vmatmul.msk.f32.vlgmr.msra.gmra.mxu0 %vm40_vm0, %v29_v2 }
   0xa   :  { %76 = vmatpush.msrb.mxu0 %v39_v6 }
   0xc   :  { %77 = vmatpush.msrb.mxu0 %v37_v7 }
   0xe   :  { %78 = vmatpush.msrb.mxu0 %v35_v8 }
  0x10   :  { %79 = vmatpush.msrb.mxu0 %v33_v9 }
  0x11   :  { %662 = vmatmul.msk.f32.vlgmr.msrb.gmra.mxu0 %vm40_vm0, %v29_v2  ;;  %vm426_vm0 = vcmask 786048  }
  0x86   :  { %v833_v13 = vpop.f32.mrf.mxu0 }
  0x87   :  { %180 = vrot.lane.b32.xlu0 %v833_v13, %s742_s23  ;;  %150 = vmatpush.msra.mxu3 %v833_v13 }
  0x89   :  { %v838_v22 = vpop.f32.mrf.mxu2 }
  0x8a   :  { %v378_v23 = vperm.slane %v838_v22, 5  ;;  %v216_v25 = vperm.slane %v838_v22, 2  ;;  %v113_v26 = vperm.slane %v838_v22, 0  ;;  %v486_v37 = vperm.slane %v838_v22, 7 }
  0x8b   :  { %v432_v40 = vperm.slane %v838_v22, 6  ;;  %v270_v45 = vperm.slane %v838_v22, 3  ;;  %v161_v46 = vperm.slane %v838_v22, 1  ;;  %v324_v2 = vperm.slane %v838_v22, 4 }
  0x8e   :  { %v81_v14 = vpop.f32.mrf.mxu0 }
  0x8f   :  { %375 = vperm.xlu2 %694, %v81_v14   ;;  %213 = vperm.xlu1 %692, %v81_v14  }
  0x90   :  { %110 = vperm.xlu0 %690, %v81_v14  }
  0x97   :  { %695 = vset.pattern.permute.xlu2 %v743_v15  ;;  %693 = vset.pattern.permute.xlu1 %v744_v16 }
  0x98   :  { %691 = vset.pattern.permute.xlu0 %v745_v17  ;;  %429 = vperm.xlu2 %695, %v81_v14  }
  0x99   :  { %267 = vperm.xlu1 %693, %v81_v14   ;;  %158 = vperm.xlu0 %691, %v81_v14  }
  0xa0   :  { %697 = vset.pattern.permute.xlu2 %v746_v18 }
  0xa1   :  { %696 = vset.pattern.permute.xlu1 %v747_v19  ;;  %483 = vperm.xlu2 %697, %v81_v14  }
  0xa2   :  { %321 = vperm.xlu1 %696, %v81_v14   ;;  %698 = vset.pattern.permute.xlu0 %v747_v19 }
  0xe9   :  { %v376_v20 = vpop.permute.xlu2 %375 }
  0xea   :  { %v379_v28 = vadd.f32 %v378_v23, %v376_v20 }
  0xec   :  { %v381_v35 = vmul.f32 0.2, %v379_v28  ;;  %vm380_vm5 = vcmp.gt.f32.partialorder %v379_v28, 0.0 }
  0xee   :  { %v382_v47 = vsel %vm380_vm5, %v379_v28, %v381_v35 }
  0xef   :  { %v864_v54 = vsel %vm31_vm3, %v382_v47, -1e+30 }
  0xf0   :  { %v384_v61 = vsel %vm119_vm4, %v864_v54, -inf }
  0xf2   :  { %v430_v24 = vpop.permute.xlu2 %429 }
  0xf3   :  { %v433_v51 = vadd.f32 %v432_v40, %v430_v24 }
  0xf5   :  { %v435_v58 = vmul.f32 0.2, %v433_v51  ;;  %vm434_vm9 = vcmp.gt.f32.partialorder %v433_v51, 0.0 }
  0xf7   :  { %v436_v5 = vsel %vm434_vm9, %v433_v51, %v435_v58 }
  0xf8   :  { %v437_v9 = vsel %vm31_vm3, %v436_v5, -1e+30 }
  0xf9   :  { %v181_v21 = vpop.permute.xlu0 %180  ;;  %v438_v12 = vsel %vm119_vm4, %v437_v9, -inf }
  0xfa   :  { %201 = vmatpush.msrb.mxu3 %v181_v21 }
  0xfb   :  { %v484_v41 = vpop.permute.xlu2 %483 }
  0xfc   :  { %v487_v48 = vadd.f32 %v486_v37, %v484_v41 }
  0xfe   :  { %v489_v57 = vmul.f32 0.2, %v487_v48  ;;  %vm488_vm8 = vcmp.gt.f32.partialorder %v487_v48, 0.0 }
 0x100   :  { %v490_v3 = vsel %vm488_vm8, %v487_v48, %v489_v57 }
 0x101   :  { %v214_v27 = vpop.permute.xlu1 %213  ;;  %v877_v7 = vsel %vm31_vm3, %v490_v3, -1e+30 }
 0x102   :  { %v217_v29 = vadd.f32 %v216_v25, %v214_v27  ;;  %v111_v30 = vpop.permute.xlu0 %110  ;;  %v492_v10 = vsel %vm119_vm4, %v877_v7, -inf }
 0x103   :  { %v114_v31 = vadd.f32 %v113_v26, %v111_v30 }
 0x104   :  { %v219_v33 = vmul.f32 0.2, %v217_v29  ;;  %vm218_vm1 = vcmp.gt.f32.partialorder %v217_v29, 0.0 }
 0x105   :  { %v116_v34 = vmul.f32 0.2, %v114_v31  ;;  %vm115_vm2 = vcmp.gt.f32.partialorder %v114_v31, 0.0 }
 0x106   :  { %v220_v36 = vsel %vm218_vm1, %v217_v29, %v219_v33  ;;  %vm480_vm1 = vcmask 917248  }
 0x107   :  { %v852_v38 = vsel %vm31_vm3, %v220_v36, -1e+30  ;;  %v117_v39 = vsel %vm115_vm2, %v114_v31, %v116_v34  ;;  %vm534_vm2 = vcmask 1048448  }
 0x108   :  { %v222_v42 = vsel %vm119_vm4, %v852_v38, -inf  ;;  %v118_v43 = vsel %vm31_vm3, %v117_v39, -1e+30 }
 0x109   :  { %223 = vmax.xlane.f32.xlu2 %v222_v42  ;;  %v120_v44 = vsel %vm119_vm4, %v118_v43, -inf }
 0x10a   :  { %121 = vmax.xlane.f32.xlu0 %v120_v44 }
 0x10b   :  { %v268_v49 = vpop.permute.xlu1 %267  ;;  %v159_v50 = vpop.permute.xlu0 %158 }
 0x10c   :  { %v271_v52 = vadd.f32 %v270_v45, %v268_v49  ;;  %v162_v53 = vadd.f32 %v161_v46, %v159_v50 }
 0x10e   :  { %v273_v55 = vmul.f32 0.2, %v271_v52  ;;  %v164_v56 = vmul.f32 0.2, %v162_v53  ;;  %vm272_vm6 = vcmp.gt.f32.partialorder %v271_v52, 0.0  ;;  %vm163_vm7 = vcmp.gt.f32.partialorder %v162_v53, 0.0 }
 0x110   :  { %v274_v59 = vsel %vm272_vm6, %v271_v52, %v273_v55  ;;  %v165_v60 = vsel %vm163_vm7, %v162_v53, %v164_v56  ;;  %vm655_vm7 = vcmask 31744  }
 0x111   :  { %v275_v62 = vsel %vm31_vm3, %v274_v59, -1e+30  ;;  %v166_v63 = vsel %vm31_vm3, %v165_v60, -1e+30 }
 0x112   :  { %385 = vmax.xlane.f32.xlu0 %v384_v61  ;;  %v276_v0 = vsel %vm119_vm4, %v275_v62, -inf  ;;  %v167_v1 = vsel %vm119_vm4, %v166_v63, -inf }
 0x113   :  { %277 = vmax.xlane.f32.xlu2 %v276_v0  ;;  %168 = vmax.xlane.f32.xlu1 %v167_v1 }
 0x114   :  { %v322_v4 = vpop.permute.xlu1 %321 }
 0x115   :  { %v325_v6 = vadd.f32 %v324_v2, %v322_v4 }
 0x117   :  { %v327_v8 = vmul.f32 0.2, %v325_v6  ;;  %vm326_vm10 = vcmp.gt.f32.partialorder %v325_v6, 0.0 }
 0x119   :  { %v328_v11 = vsel %vm326_vm10, %v325_v6, %v327_v8 }
 0x11a   :  { %493 = vmax.xlane.f32.xlu0 %v492_v10  ;;  %v329_v14 = vsel %vm31_vm3, %v328_v11, -1e+30 }
 0x11b   :  { %439 = vmax.xlane.f32.xlu1 %v438_v12  ;;  %v330_v15 = vsel %vm119_vm4, %v329_v14, -inf }
 0x11c   :  { %331 = vmax.xlane.f32.xlu2 %v330_v15 }
 0x12e   :  { %288 = vrot.lane.b32.xlu0 %v833_v13, %s748_s1 }
 0x134   :  { %234 = vrot.lane.b32.xlu2 %v833_v13, %s749_s25 }
 0x17c   :  { %v224_v16 = vpop.xlane.xlu2 %223 }
 0x17d   :  { %v225_v17 = vsub.f32 %v852_v38, %v224_v16  ;;  %v122_v18 = vpop.xlane.xlu0 %121 }
 0x17e   :  { %v123_v19 = vsub.f32 %v118_v43, %v122_v18 }
 0x17f   :  { %v226_v20 = vmul.f32 1.442695, %v225_v17 }
 0x180   :  { %v124_v21 = vmul.f32 1.442695, %v123_v19 }
 0x181   :  { %701 = vpow2.f32 %v226_v20 }
 0x182   :  { %703 = vpow2.f32 %v124_v21 }
 0x185   :  { %v386_v22 = vpop.xlane.xlu0 %385 }
 0x186   :  { %v278_v23 = vpop.xlane.xlu2 %277  ;;  %v169_v24 = vpop.xlane.xlu1 %168  ;;  %v387_v29 = vsub.f32 %v864_v54, %v386_v22 }
 0x187   :  { %v702_v25 = vpop.eup %701  ;;  %v279_v26 = vsub.f32 %v275_v62, %v278_v23  ;;  %v170_v27 = vsub.f32 %v166_v63, %v169_v24 }
 0x188   :  { %v704_v28 = vpop.eup %703  ;;  %v895_v30 = vsel %vm31_vm3, %v702_v25, 0.0  ;;  %v388_v37 = vmul.f32 1.442695, %v387_v29 }
 0x189   :  { %v280_v31 = vmul.f32 1.442695, %v279_v26  ;;  %v171_v33 = vmul.f32 1.442695, %v170_v27  ;;  %v229_v34 = vsel %vm119_vm4, %v895_v30, 0.0  ;;  %v901_v35 = vsel %vm31_vm3, %v704_v28, 0.0 }
 0x18a   :  { %230 = vadd.xlane.f32.xlu0 %v229_v34  ;;  %v127_v36 = vsel %vm119_vm4, %v901_v35, 0.0 }
 0x18b   :  { %705 = vpow2.f32 %v280_v31  ;;  %128 = vadd.xlane.f32.xlu1 %v127_v36 }
 0x18c   :  { %707 = vpow2.f32 %v171_v33 }
 0x18d   :  { %709 = vpow2.f32 %v388_v37  ;;  %v494_v49 = vpop.xlane.xlu0 %493 }
 0x18e   :  { %v440_v38 = vpop.xlane.xlu1 %439  ;;  %v495_v52 = vsub.f32 %v877_v7, %v494_v49  ;;  %v558_v49 = vld [vmem:[%s1025_s5 + $0x50] sm:$0xff] }
 0x18f   :  { %v441_v39 = vsub.f32 %v437_v9, %v440_v38  ;;  %v332_v40 = vpop.xlane.xlu2 %331 }
 0x190   :  { %v333_v41 = vsub.f32 %v329_v14, %v332_v40  ;;  %v496_v57 = vmul.f32 1.442695, %v495_v52  ;;  %v555_v52 = vld [vmem:[%s1025_s5 + $0x38] sm:$0xff] }
 0x191   :  { %v706_v42 = vpop.eup %705  ;;  %v442_v43 = vmul.f32 1.442695, %v441_v39 }
 0x192   :  { %v708_v44 = vpop.eup %707  ;;  %v282_v45 = vsel %vm31_vm3, %v706_v42, 0.0  ;;  %v334_v46 = vmul.f32 1.442695, %v333_v41  ;;  %v563_v42 = vld [vmem:[%s1025_s5 + $0x78] sm:$0xff] }
 0x193   :  { %711 = vpow2.f32 %v442_v43  ;;  %v173_v47 = vsel %vm31_vm3, %v708_v44, 0.0  ;;  %v283_v48 = vsel %vm119_vm4, %v282_v45, 0.0  ;;  %v710_v51 = vpop.eup %709  ;;  %v562_v43 = vld [vmem:[%s1025_s5 + $0x70] sm:$0xff]  ;;  %v561_v44 = vld [vmem:[%s1025_s5 + $0x68] sm:$0xff] }
 0x194   :  { %v174_v50 = vsel %vm119_vm4, %v173_v47, 0.0  ;;  %284 = vadd.xlane.f32.xlu1 %v283_v48  ;;  %713 = vpow2.f32 %v334_v46  ;;  %v914_v55 = vsel %vm31_vm3, %v710_v51, 0.0  ;;  %v559_v48 = vld [vmem:[%s1025_s5 + $0x58] sm:$0xff]  ;;  %v556_v51 = vld [vmem:[%s1025_s5 + $0x40] sm:$0xff] }
 0x195   :  { %175 = vadd.xlane.f32.xlu2 %v174_v50  ;;  %v391_v59 = vsel %vm119_vm4, %v914_v55, 0.0  ;;  %715 = vpow2.f32 %v496_v57  ;;  %v557_v50 = vld [vmem:[%s1025_s5 + $0x48] sm:$0xff]  ;;  %v550_v57 = vld [vmem:[%s1025_s5 + $0x10] sm:$0xff] }
 0x197   :  { %v235_v53 = vpop.permute.xlu2 %234 }
 0x198   :  { %255 = vmatpush.msrb.mxu2 %v235_v53  ;;  %v554_v53 = vld [vmem:[%s1025_s5 + $0x30] sm:$0xff] }
 0x199   :  { %v712_v54 = vpop.eup %711 }
 0x19a   :  { %v444_v56 = vsel %vm31_vm3, %v712_v54, 0.0  ;;  %v714_v60 = vpop.eup %713  ;;  %v553_v54 = vld [vmem:[%s1025_s5 + $0x28] sm:$0xff] }
 0x19b   :  { %v445_v58 = vsel %vm119_vm4, %v444_v56, 0.0  ;;  %v336_v62 = vsel %vm31_vm3, %v714_v60, 0.0  ;;  %v716_v0 = vpop.eup %715 }
 0x19c   :  { %446 = vadd.xlane.f32.xlu1 %v445_v58  ;;  %v337_v63 = vsel %vm119_vm4, %v336_v62, 0.0  ;;  %v498_v1 = vsel %vm31_vm3, %v716_v0, 0.0  ;;  %v549_v58 = vld [vmem:[%s1025_s5 + $0x8] sm:$0xff] }
 0x19d   :  { %392 = vadd.xlane.f32.xlu2 %v391_v59  ;;  %v499_v2 = vsel %vm119_vm4, %v498_v1, 0.0  ;;  %v548_v59 = vld [vmem:[%s1025_s5] sm:$0xff] }
 0x19e   :  { %450 = vrot.lane.b32.xlu0 %v833_v13, %s750_s26 }
 0x1a0   :  { %v289_v61 = vpop.permute.xlu0 %288 }
 0x1a1   :  { %309 = vmatpush.msra.mxu0 %v289_v61 }
 0x1a4   :  { %338 = vadd.xlane.f32.xlu1 %v337_v63  ;;  %v699_v63 = vld [vmem:[%s1024_s4] ss:$0 sm:$0xff] }
 0x1a6   :  { %504 = vrot.lane.b32.xlu0 %v833_v13, %s751_s27 }
 0x1ac   :  { %500 = vadd.xlane.f32.xlu1 %v499_v2 }
 0x1b5   :  { %342 = vrot.lane.b32.xlu2 %v833_v13, %s752_s28 }
 0x1c5   :  { %396 = vrot.lane.b32.xlu1 %v833_v13, %s753_s29 }
 0x1fd   :  { %v231_v3 = vpop.xlane.xlu0 %230 }
 0x1fe   :  { %v129_v4 = vpop.xlane.xlu1 %128  ;;  %717 = vrcp.f32 %v231_v3 }
 0x1ff   :  { %719 = vrcp.f32 %v129_v4 }
 0x204   :  { %v718_v5 = vpop.eup %717 }
 0x205   :  { %v720_v6 = vpop.eup %719  ;;  %v233_v7 = vmul.f32 %v718_v5, %v895_v30 }
 0x206   :  { %v131_v8 = vmul.f32 %v720_v6, %v901_v35 }
 0x207   :  { %v285_v9 = vpop.xlane.xlu1 %284  ;;  %667 = vmatmul.msk.f32.vlgmr.msrb.gmra.mxu2 %vm119_vm4, %v233_v7  ;;  %v584_v7 = vld [vmem:[%s1026_s6] sm:$0x1] }
 0x208   :  { %v176_v10 = vpop.xlane.xlu2 %175  ;;  %721 = vrcp.f32 %v285_v9  ;;  %665 = vmatmul.msk.f32.vlgmr.msra.gmra.mxu3 %vm119_vm4, %v131_v8 }
 0x209   :  { %723 = vrcp.f32 %v176_v10 }
 0x20e   :  { %v722_v11 = vpop.eup %721 }
 0x20f   :  { %v724_v13 = vpop.eup %723  ;;  %v287_v12 = vmul.f32 %v722_v11, %v282_v45  ;;  %v447_v14 = vpop.xlane.xlu1 %446 }
 0x210   :  { %725 = vrcp.f32 %v447_v14  ;;  %v393_v15 = vpop.xlane.xlu2 %392  ;;  %v178_v16 = vmul.f32 %v724_v13, %v173_v47  ;;  %v451_v17 = vpop.permute.xlu0 %450  ;;  %v560_v47 = vld [vmem:[%s1025_s5 + $0x60] sm:$0xff] }
 0x211   :  { %668 = vmatmul.msk.f32.vlgmr.msra.gmra.mxu0 %vm119_vm4, %v287_v12  ;;  %471 = vmatpush.msra.mxu2 %v451_v17 }
 0x212   :  { %666 = vmatmul.msk.f32.vlgmr.msrb.gmra.mxu3 %vm119_vm4, %v178_v16 }
 0x216   :  { %v726_v18 = vpop.eup %725 }
 0x217   :  { %v449_v19 = vmul.f32 %v726_v18, %v444_v56  ;;  %v339_v20 = vpop.xlane.xlu1 %338  ;;  %v551_v56 = vld [vmem:[%s1025_s5 + $0x18] sm:$0xff] }
 0x218   :  { %727 = vrcp.f32 %v339_v20  ;;  %v343_v21 = vpop.permute.xlu2 %342  ;;  %v505_v22 = vpop.permute.xlu0 %504 }
 0x219   :  { %363 = vmatpush.msra.mxu1 %v343_v21  ;;  %671 = vmatmul.msk.f32.vlgmr.msra.gmra.mxu2 %vm119_vm4, %v449_v19 }
 0x21a   :  { %525 = vmatpush.msrb.mxu0 %v505_v22 }
 0x21b   :  { %564 = vmatpush.msrb.mxu1 %v563_v42 }
 0x21d   :  { %565 = vmatpush.msrb.mxu1 %v562_v43 }
 0x21e   :  { %v728_v23 = vpop.eup %727 }
 0x21f   :  { %v501_v24 = vpop.xlane.xlu1 %500  ;;  %v341_v25 = vmul.f32 %v728_v23, %v336_v62  ;;  %566 = vmatpush.msrb.mxu1 %v561_v44 }
 0x220   :  { %729 = vrcp.f32 %v501_v24 }
 0x221   :  { %669 = vmatmul.msk.f32.vlgmr.msra.gmra.mxu1 %vm119_vm4, %v341_v25  ;;  %731 = vrcp.f32 %v393_v15 }
 0x222   :  { %567 = vmatpush.msrb.mxu1 %v560_v47 }
 0x224   :  { %568 = vmatpush.msrb.mxu1 %v559_v48 }
 0x226   :  { %v730_v26 = vpop.eup %729  ;;  %569 = vmatpush.msrb.mxu1 %v558_v49 }
 0x227   :  { %v503_v27 = vmul.f32 %v730_v26, %v498_v1  ;;  %v732_v28 = vpop.eup %731  ;;  %v700_v26 = vld [vmem:[%s1027_s7] ss:$0 sm:$0xff] }
 0x228   :  { %v395_v29 = vmul.f32 %v732_v28, %v914_v55  ;;  %570 = vmatpush.msrb.mxu1 %v557_v50  ;;  %v552_v55 = vld [vmem:[%s1025_s5 + $0x20] sm:$0xff] }
 0x229   :  { %672 = vmatmul.msk.f32.vlgmr.msrb.gmra.mxu0 %vm119_vm4, %v503_v27 }
 0x22a   :  { %571 = vmatpush.msrb.mxu1 %v556_v51 }
 0x22c   :  { %572 = vmatpush.msrb.mxu1 %v555_v52 }
 0x22e   :  { %573 = vmatpush.msrb.mxu1 %v554_v53 }
 0x230   :  { %574 = vmatpush.msrb.mxu1 %v553_v54 }
 0x232   :  { %575 = vmatpush.msrb.mxu1 %v552_v55 }
 0x234   :  { %576 = vmatpush.msrb.mxu1 %v551_v56 }
 0x236   :  { %577 = vmatpush.msrb.mxu1 %v550_v57 }
 0x237   :  { %v397_v30 = vpop.permute.xlu1 %396 }
 0x238   :  { %417 = vmatpush.msra.mxu3 %v397_v30  ;;  %578 = vmatpush.msrb.mxu1 %v549_v58 }
 0x239   :  { %670 = vmatmul.msk.f32.vlgmr.msra.gmra.mxu3 %vm119_vm4, %v395_v29 }
 0x23a   :  { %579 = vmatpush.msrb.mxu1 %v548_v59 }
 0x28a   :  { %v257_v31 = vpop.f32.mrf.mxu2 }
 0x28b   :  { %v152_v33 = vpop.f32.mrf.mxu3  ;;  %261 = vrot.lane.b32.xlu0 %v257_v31, %s750_s26 }
 0x28c   :  { %156 = vst.msk [vmem:[#allocation2] sm:$0xff] %vm155_vm11, %v152_v33 }
 0x28e   :  { %v311_v34 = vpop.f32.mrf.mxu0 }
 0x28f   :  { %315 = vrot.lane.b32.xlu2 %v311_v34, %s753_s29 }
 0x295   :  { %v203_v35 = vpop.f32.mrf.mxu3 }
 0x297   :  { %207 = vrot.lane.b32.xlu2 %v203_v35, %s751_s27 }
 0x29c   :  { %v473_v36 = vpop.f32.mrf.mxu2 }
 0x29e   :  { %v365_v37 = vpop.f32.mrf.mxu1 }
 0x29f   :  { %369 = vrot.lane.b32.xlu1 %v365_v37, %s752_s28  ;;  %477 = vrot.lane.b32.xlu2 %v473_v36, %s749_s25 }
 0x2a6   :  { %v527_v38 = vpop.f32.mrf.mxu0 }
 0x2a7   :  { %531 = vrot.lane.b32.xlu1 %v527_v38, %s742_s23 }
 0x2bc   :  { %v419_v39 = vpop.f32.mrf.mxu3 }
 0x2bd   :  { %423 = vrot.lane.b32.xlu0 %v419_v39, %s748_s1 }
 0x2e9   :  { %v316_v40 = vpop.permute.xlu2 %315 }
 0x2f1   :  { %v208_v41 = vpop.permute.xlu2 %207 }
 0x2f2   :  { %211 = vst.msk [vmem:[#allocation2] sm:$0xff] %vm210_vm12, %v208_v41 }
 0x2f9   :  { %v478_v61 = vpop.permute.xlu2 %477 }
 0x2fd   :  { %v262_v45 = vpop.permute.xlu0 %261 }
 0x2fe   :  { %265 = vst.msk [vmem:[#allocation2] sm:$0xff] %vm264_vm13, %v262_v45 }
 0x2ff   :  { %319 = vst.msk [vmem:[#allocation2] sm:$0xff] %vm318_vm14, %v316_v40 }
 0x311   :  { %v370_v46 = vpop.permute.xlu1 %369 }
 0x312   :  { %373 = vst.msk [vmem:[#allocation2] sm:$0xff] %vm372_vm15, %v370_v46 }
 0x319   :  { %v532_v62 = vpop.permute.xlu1 %531 }
 0x32f   :  { %v424_v60 = vpop.permute.xlu0 %423 }
 0x330   :  { %427 = vst.msk [vmem:[#allocation2] sm:$0xff] %vm426_vm0, %v424_v60 }
 0x331   :  { %481 = vst.msk [vmem:[#allocation2] sm:$0xff] %vm480_vm1, %v478_v61 }
 0x332   :  { %535 = vst.msk [vmem:[#allocation2] sm:$0xff] %vm534_vm2, %v532_v62 }
 0x339   :  { %v536_v0 = vld [vmem:[#allocation2] sm:$0xff] }
 0x33a   :  { %v541_v1 = vadd.f32 %v699_v63, %v536_v0 }
 0x33c   :  { %v543_v2 = vmin.f32 %v541_v1, 0.0  ;;  %vm542_vm5 = vcmp.gt.f32.partialorder %v541_v1, 0.0 }
 0x33e   :  { %v544_v3 = vmul.f32 1.442695, %v543_v2 }
 0x340   :  { %733 = vpow2.f32 %v544_v3 }
 0x346   :  { %v734_v4 = vpop.eup %733 }
 0x347   :  { %v673_v5 = vadd.f32 -1.0, %v734_v4 }
 0x349   :  { %v547_v6 = vsel %vm542_vm5, %v541_v1, %v673_v5 }
 0x34a   :  { %580 = vmatmul.f32.vlgmr.msrb.gmra.mxu1 %v547_v6  ;;  %600 = vmatpush.xpose.msrb.mxu3 %v547_v6 }
 0x34d   :  { %601 = vmatmul.f32.vlgmr.msrb.gmra.mxu3 %v584_v7 }
 0x3c7   :  { %v581_v8 = vpop.f32.mrf.mxu1 }
 0x3c8   :  { %607 = vperm.xlu0 %698, %v581_v8   ;;  %650 = vmatpush.msrb.mxu2 %v581_v8 }
 0x3d0   :  { %v602_v9 = vpop.f32.mrf.mxu3 }
 0x3d1   :  { %v610_v10 = vperm.slane %v602_v9, 0 }
 0x43a   :  { %v608_v11 = vpop.permute.xlu0 %607 }
 0x43b   :  { %v611_v13 = vadd.f32 %v610_v10, %v608_v11 }
 0x43d   :  { %v613_v12 = vmul.f32 0.2, %v611_v13  ;;  %vm612_vm6 = vcmp.gt.f32.partialorder %v611_v13, 0.0 }
 0x43f   :  { %v614_v14 = vsel %vm612_vm6, %v611_v13, %v613_v12 }
 0x440   :  { %v615_v15 = vsel %vm31_vm3, %v614_v14, -1e+30 }
 0x441   :  { %v616_v16 = vsel %vm119_vm4, %v615_v15, -inf }
 0x442   :  { %617 = vmax.xlane.f32.xlu2 %v616_v16 }
 0x4b5   :  { %v618_v17 = vpop.xlane.xlu2 %617 }
 0x4b6   :  { %v619_v18 = vsub.f32 %v615_v15, %v618_v17 }
 0x4b8   :  { %v620_v19 = vmul.f32 1.442695, %v619_v18 }
 0x4ba   :  { %735 = vpow2.f32 %v620_v19 }
 0x4c0   :  { %v736_v20 = vpop.eup %735 }
 0x4c1   :  { %v622_v21 = vsel %vm31_vm3, %v736_v20, 0.0 }
 0x4c2   :  { %v623_v22 = vsel %vm119_vm4, %v622_v21, 0.0 }
 0x4c3   :  { %624 = vadd.xlane.f32.xlu1 %v623_v22 }
 0x536   :  { %v625_v23 = vpop.xlane.xlu1 %624 }
 0x537   :  { %737 = vrcp.f32 %v625_v23 }
 0x53d   :  { %v738_v24 = vpop.eup %737 }
 0x53e   :  { %v627_v25 = vmul.f32 %v738_v24, %v622_v21 }
 0x540   :  { %674 = vmatmul.msk.f32.vlgmr.msrb.gmra.mxu2 %vm119_vm4, %v627_v25 }
 0x5c3   :  { %v652_v27 = vpop.f32.mrf.mxu2 }
 0x5c4   :  { %v653_v28 = vadd.f32 %v700_v26, %v652_v27 }
 0x5c6   :  { %656 = vst.msk [vmem:[%s1028_s8] sm:$0xff] %vm655_vm7, %v653_v28 }

</bundles_post_ra>
